<compile_context>
chip_gen: v7x
topology: tpu7x:2x2x1
jax: 0.10.0
libtpu: 0.0.40
codegen_flags: <defaults>
</compile_context>

<pallas_src>
import jax
import jax.numpy as jnp
from jax.experimental import pallas as pl
from jax.experimental.pallas import tpu as pltpu

_SUBLANE = 8
_LANES = 128
# Keep the (tile_rows, pack*nc) f32 one-hot intermediate a few MiB at most:
# safe under v7x's 64 MiB physical / 32 MiB scoped-default VMEM.
_ONEHOT_VMEM_CAP_BYTES = 8 * 1024 * 1024


def _round_up(x: int, m: int) -> int:
    return ((x + m - 1) // m) * m


def _packed_embedding_kernel(idx_ref, w_ref, o_ref):
    """Gather `pack` tokens per 128-lane output row via a one-hot MXU matmul.

    idx_ref: (tile_rows, pack) int32 -- slot-offset indices (slot k already +k*nc)
    w_ref:   (pack*nc, pack*emb)     -- block-diagonal table (pack copies of W)
    o_ref:   (tile_rows, pack*emb)   -- pack embeddings concatenated per row
    """
    idx = idx_ref[...]
    tile_rows, pack = idx.shape            # static shapes at trace time
    k_dim = w_ref.shape[0]                 # pack * nc

    cls = jax.lax.broadcasted_iota(jnp.int32, (tile_rows, k_dim), 1)
    hit = idx[:, 0:1] == cls
    for k in range(1, pack):               # pack <= 4, static Python loop
        hit = jnp.logical_or(hit, idx[:, k : k + 1] == cls)

    # 0/1 values are exact in the table's dtype (f32 or bf16) -> exact row pick.
    # NOTE: nc is tiny here, so this matmul is a corner of the MXU; the kernel
    # is DMA/overhead bound, so a VPU-select rewrite (review item 8) is skipped.
    onehot = hit.astype(w_ref.dtype)
    out = jnp.dot(onehot, w_ref[...], preferred_element_type=jnp.float32)
    o_ref[...] = out.astype(o_ref.dtype)


def embedding_lookup(indices: jax.Array, table: jax.Array, *,
                     tile_tokens: int = 4096) -> jax.Array:
    """Pallas TPU equivalent of nn.Embedding(...)(indices): table[indices]."""
    nc, emb = table.shape
    orig_shape = indices.shape

    # Pack `pack` tokens per 128-lane output row (4 for emb=32).
    pack = _LANES // emb if (emb <= _LANES and _LANES % emb == 0) else 1

    flat = indices.reshape(-1).astype(jnp.int32)
    # Clamp so out-of-range/negative indices can't alias another packed slot's
    # block of the block-diagonal table (nn.Embedding would raise instead).
    flat = jnp.clip(flat, 0, nc - 1)
    n_tok = flat.shape[0]

    rows = pl.cdiv(n_tok, pack)
    if rows * pack != n_tok:
        # Only pad to the packing boundary (<= pack-1 tokens); sliced off below.
        flat = jnp.pad(flat, (0, rows * pack - n_tok))

    # Slot-offset so slot k selects rows [k*nc, (k+1)*nc) of the big table.
    idx = flat.reshape(rows, pack) + (jnp.arange(pack, dtype=jnp.int32) * nc)[None, :]

    # Block-diagonal table: pack copies of W on the diagonal, (pack*nc, pack*emb).
    w_big = jnp.kron(jnp.eye(pack, dtype=table.dtype), table)
    k_dim, n_dim = w_big.shape

    # ---- tile selection -----------------------------------------------------
    cap_rows = max(_SUBLANE,
                   ((_ONEHOT_VMEM_CAP_BYTES // (k_dim * 4)) // _SUBLANE) * _SUBLANE)
    tile_rows_cap = max(_SUBLANE, min(_round_up(max(tile_tokens // pack, 1), _SUBLANE),
                                      cap_rows))
    if rows <= _SUBLANE:
        tile_rows = rows                                   # one tiny full block
    elif rows <= 2 * tile_rows_cap:
        # At least two grid steps so both v7x TensorCores get a tile.
        tile_rows = min(tile_rows_cap, _round_up(pl.cdiv(rows, 2), _SUBLANE))
    else:
        tile_rows = tile_rows_cap
    grid = (pl.cdiv(rows, tile_rows),)

    out = pl.pallas_call(
        _packed_embedding_kernel,
        out_shape=jax.ShapeDtypeStruct((rows, n_dim), table.dtype),
        grid_spec=pltpu.PrefetchScalarGridSpec(
            num_scalar_prefetch=0,
            grid=grid,
            in_specs=[
                # Packed, slot-offset indices in the same row layout as the output.
                pl.BlockSpec((tile_rows, pack), lambda t: (t, 0)),
                # Constant index_map -> fetched once, VMEM-resident; single
                # buffer since it never changes across grid steps.
                pl.BlockSpec((k_dim, n_dim), lambda t: (0, 0),
                             pipeline_mode=pl.Buffered(1)),
            ],
            out_specs=pl.BlockSpec((tile_rows, n_dim), lambda t: (t, 0)),
        ),
        compiler_params=pltpu.CompilerParams(
            dimension_semantics=("parallel",)),   # v7x: shard tiles across both TCs
    )(idx, w_big)

    # (rows, pack*emb) -> (rows*pack, emb): contiguous reinterpret, no copy.
    out = out.reshape(rows * pack, emb)
    if rows * pack != n_tok:
        out = out[:n_tok]
    return out.reshape(*orig_shape, emb)


class SEmbedding:
    """JAX/Pallas port of the PyTorch s_embedding module."""

    def __init__(self, nc: int, key: jax.Array, emb_dim: int = 32):
        # nn.Embedding default weight init: N(0, 1)
        self.weight = jax.random.normal(key, (nc, emb_dim), dtype=jnp.float32)

    def __call__(self, x: jax.Array) -> jax.Array:
        return embedding_lookup(x, self.weight)


if __name__ == "__main__":
    key = jax.random.PRNGKey(0)
    nc = 10
    key, k_w, k_x1, k_x2 = jax.random.split(key, 4)

    module = SEmbedding(nc, k_w)

    # Case 1: small 2-D index batch (batch=2, seq=8) -> single full block.
    x1 = jax.random.randint(k_x1, (2, 8), 0, nc, dtype=jnp.int32)
    out1 = jax.block_until_ready(module(x1))
    assert out1.shape == (2, 8, 32), out1.shape
    ref1 = jnp.take(module.weight, x1.reshape(-1), axis=0).reshape(2, 8, 32)
    assert jnp.allclose(out1, ref1, rtol=1e-6, atol=1e-6)

    # Case 2: token count not a multiple of the 4-token packing or the tile ->
    # exercises the packing pad, the masked partial last block and a 2-step grid.
    x2 = jax.random.randint(k_x2, (3, 7, 5), 0, nc, dtype=jnp.int32)
    out2 = jax.block_until_ready(module(x2))
    assert out2.shape == (3, 7, 5, 32), out2.shape
    ref2 = jnp.take(module.weight, x2.reshape(-1), axis=0).reshape(3, 7, 5, 32)
    assert jnp.allclose(out2, ref2, rtol=1e-6, atol=1e-6)

    print("KERNEL_OK")
</pallas_src>

<mosaic_0001>
module attributes {stable_mosaic.version = 11 : i64} {
  func.func @_packed_embedding_kernel(%arg0: i32, %arg1: memref<4x4xi32, #tpu.memory_space<vmem>>, %arg2: memref<40x128xf32, #tpu.memory_space<vmem>>, %arg3: memref<4x128xf32, #tpu.memory_space<vmem>>) attributes {dimension_semantics = [#tpu.dimension_semantics<parallel>], iteration_bounds = array<i64: 1>, scalar_prefetch = 0 : i64, scratch_operands = 0 : i64, tpu.core_type = #tpu.core_type<tc>, window_params = [{transform_indices = @transform_0, window_bounds = array<i64: 4, 4>}, {pipeline_mode = #tpu.pipeline_mode<synchronous>, transform_indices = @transform_1, window_bounds = array<i64: 40, 128>}, {transform_indices = @transform_2, window_bounds = array<i64: 4, 128>}]} {
    %c0 = arith.constant 0 : index
    %c0_0 = arith.constant 0 : index
    %0 = vector.load %arg1[%c0, %c0_0] : memref<4x4xi32, #tpu.memory_space<vmem>>, vector<4x4xi32>
    %1 = tpu.iota {dimensions = array<i32: 1>} : vector<4x40xi32>
    %2 = vector.extract_strided_slice %0 {offsets = [0, 0], sizes = [4, 1], strides = [1, 1]} : vector<4x4xi32> to vector<4x1xi32>
    %3 = vector.broadcast %2 : vector<4x1xi32> to vector<4x40xi32>
    %4 = arith.cmpi eq, %3, %1 : vector<4x40xi32>
    %5 = vector.extract_strided_slice %0 {offsets = [0, 1], sizes = [4, 1], strides = [1, 1]} : vector<4x4xi32> to vector<4x1xi32>
    %6 = vector.broadcast %5 : vector<4x1xi32> to vector<4x40xi32>
    %7 = arith.cmpi eq, %6, %1 : vector<4x40xi32>
    %8 = arith.ori %4, %7 : vector<4x40xi1>
    %9 = vector.extract_strided_slice %0 {offsets = [0, 2], sizes = [4, 1], strides = [1, 1]} : vector<4x4xi32> to vector<4x1xi32>
    %10 = vector.broadcast %9 : vector<4x1xi32> to vector<4x40xi32>
    %11 = arith.cmpi eq, %10, %1 : vector<4x40xi32>
    %12 = arith.ori %8, %11 : vector<4x40xi1>
    %13 = vector.extract_strided_slice %0 {offsets = [0, 3], sizes = [4, 1], strides = [1, 1]} : vector<4x4xi32> to vector<4x1xi32>
    %14 = vector.broadcast %13 : vector<4x1xi32> to vector<4x40xi32>
    %15 = arith.cmpi eq, %14, %1 : vector<4x40xi32>
    %16 = arith.ori %12, %15 : vector<4x40xi1>
    %17 = arith.extui %16 : vector<4x40xi1> to vector<4x40xi32>
    %18 = arith.sitofp %17 : vector<4x40xi32> to vector<4x40xf32>
    %c0_1 = arith.constant 0 : index
    %c0_2 = arith.constant 0 : index
    %19 = vector.load %arg2[%c0_1, %c0_2] : memref<40x128xf32, #tpu.memory_space<vmem>>, vector<40x128xf32>
    %cst = arith.constant dense<0.000000e+00> : vector<4x128xf32>
    %20 = tpu.matmul %18, %19, %cst {dimension_numbers = #tpu.dot_dimension_numbers<[1], [0], [0], [1], [0, 0, 1, 1], [], []>} : vector<4x40xf32>, vector<40x128xf32>, vector<4x128xf32> -> vector<4x128xf32>
    %c0_3 = arith.constant 0 : index
    %c0_4 = arith.constant 0 : index
    %21 = vector.load %arg3[%c0_3, %c0_4] : memref<4x128xf32, #tpu.memory_space<vmem>>, vector<4x128xf32>
    tpu.vector_store %arg3[%c0_3, %c0_4], %20 {strides = array<i32>} : memref<4x128xf32, #tpu.memory_space<vmem>>, vector<4x128xf32>,
    return
  }
  func.func @transform_0(%arg0: i32) -> (i32, i32) {
    %c0_i32 = arith.constant 0 : i32
    %c0_i32_0 = arith.constant 0 : i32
    return %arg0, %c0_i32 : i32, i32
  }
  func.func @transform_1(%arg0: i32) -> (i32, i32) {
    %c0_i32 = arith.constant 0 : i32
    %c0_i32_0 = arith.constant 0 : i32
    %c0_i32_1 = arith.constant 0 : i32
    return %c0_i32, %c0_i32_0 : i32, i32
  }
  func.func @transform_2(%arg0: i32) -> (i32, i32) {
    %c0_i32 = arith.constant 0 : i32
    %c0_i32_0 = arith.constant 0 : i32
    return %arg0, %c0_i32 : i32, i32
  }
}

</mosaic_0001>

<bundles_post_ra>
// kernel: tpu_custom_call.1
= control target key start
LH: loop header
LB: loop body
LE: loop exit
PB: predicated region body
PF: predicated region fallthrough
CT: control target
= control target key end

     0   :  { %7 = vsyncpa [#allocation3], 0  ;;  %s344_s0 = inlined_call_operand.hbm [shape: s32[4,4], index: 0, kind: input, shape index: {}]   ;;  %s345_s1 = inlined_call_operand.hbm [shape: f32[40,128], index: 1, kind: input, shape index: {}]   ;;  %s346_s2 = inlined_call_operand.hbm [shape: f32[4,128], index: 2, kind: output, shape index: {}]  }
   0x1   :  { %8 = vsyncpa [#allocation6], 0 }
   0x2   :  { %9 = vsyncpa [#allocation4], 0  ;;  %s274_s9 = smov [#allocation2]   ;;  %s275_s11 = smov [#allocation5]  }
   0x3   :  { %s16_s10 = sshll.u32 %s274_s9, 4  ;;  %s25_s12 = sshll.u32 %s275_s11, 4  ;;  %s17_s10 = int_to_ptr.vmem [resolvable:$true] %s16_s10  ;;  %s301_s12 = int_to_ptr.vmem [resolvable:$true] %s25_s12 }
   0x4   :  { %s202_s15 = scalar_lea.hbm %s344_s0, 64 }
   0x5   :  { %p203_p0 = scmp.ne.s32.totalorder %s344_s0, %s202_s15  ;;  %p206_p1 = scmp.lt.u32.totalorder %s202_s15, %s344_s0 }
   0x7   :  { %p208_p2 = pnand %p206_p1, %p203_p0 }
   0x9   :  { %211 = shalt.err (!%p208_p2)
}
   0xa   :  { %s212_s20 = scalar_lea.vmem %s17_s10, 64  ;;  %p217_p4 = scmp.lt.s32.totalorder %s17_s10, %s17_s10 }
   0xb   :  { %p213_p3 = scmp.ne.s32.totalorder %s17_s10, %s212_s20  ;;  %p218_p5 = scmp.lt.s32.totalorder %s212_s20, %s212_s20 }
   0xd   :  { %p219_p6 = por %p218_p5, %p217_p4 }
   0xf   :  { %p220_p7 = pnand %p219_p6, %p213_p3 }
  0x11   :  { %223 = shalt.err (!%p220_p7)
}
  0x12   :  { %19 = dma.hbm_to_vmem [thread:$0]  %s344_s0, 64, %s17_s10, [#allocation3]  }
  0x13   :  { %s224_s25 = scalar_lea.hbm %s345_s1, 640 }
  0x14   :  { %p225_p8 = scmp.ne.s32.totalorder %s345_s1, %s224_s25  ;;  %p228_p9 = scmp.lt.u32.totalorder %s224_s25, %s345_s1 }
  0x16   :  { %p230_p10 = pnand %p228_p9, %p225_p8 }
  0x18   :  { %233 = shalt.err (!%p230_p10)
}
  0x19   :  { %s234_s30 = scalar_lea.vmem %s301_s12, 640  ;;  %p239_p12 = scmp.lt.s32.totalorder %s301_s12, %s301_s12 }
  0x1a   :  { %p235_p11 = scmp.ne.s32.totalorder %s301_s12, %s234_s30  ;;  %p240_p13 = scmp.lt.s32.totalorder %s234_s30, %s234_s30 }
  0x1c   :  { %p241_p0 = por %p240_p13, %p239_p12 }
  0x1e   :  { %p242_p1 = pnand %p241_p0, %p235_p11 }
  0x20   :  { %245 = shalt.err (!%p242_p1)
}
  0x21   :  { %s276_s0 = smov 128   ;;  %s277_s3 = smov 8  }
  0x22   :  { %31 = dma.hbm_to_vmem [thread:$0]  %s345_s1, 640, %s301_s12, [#allocation6], %s276_s0, %s276_s0, %s277_s3  }
  0x23   :  { %268 = dma.done.wait [#allocation3], 64  }
  0x24   :  { %269 = vsyncadd [#allocation3], 4294967232 }
  0x25   :  { %270 = dma.done.wait [#allocation6], 640  }
  0x26   :  { %271 = vsyncadd [#allocation6], 4294966656  ;;  %v278_v0 = vmov 0   ;;  %v279_v1 = vmov 2   ;;  %v38_v2 = vld [vmem:[#allocation2] sm:$0xf]  ;;  %v39_v14 = vlaneseq }
  0x27   :  { %197 = vset.pattern.permute.xlu0 %v278_v0  ;;  %199 = vset.pattern.permute.xlu1 %v279_v1  ;;  %v62_v3 = vld [vmem:[#allocation5] sm:$0xff]  ;;  %v63_v4 = vld [vmem:[#allocation5 + $0x8] sm:$0xff]  ;;  %v280_v6 = vmov 0.0|0.0   ;;  %v64_v7 = vld [vmem:[#allocation5 + $0x10] sm:$0xff]  ;;  %v281_v10 = vmov 1   ;;  %v282_v11 = vmov 3  }
  0x28   :  { %42 = vperm.xlu0 %197, %v38_v2   ;;  %51 = vperm.xlu1 %199, %v38_v2   ;;  %v180_v5 = vpack.c.bf16 %v63_v4, %v62_v3  ;;  %v65_v8 = vld [vmem:[#allocation5 + $0x18] sm:$0xff]  ;;  %v283_v12 = vmov 0.0   ;;  %v66_v13 = vld [vmem:[#allocation5 + $0x20] sm:$0xff]  ;;  %vm284_vm0 = vmmov 0   ;;  %v40_v17 = vand.u32 127, %v39_v14  ;;  %s285_s1 = smov [#allocation7]  }
  0x29   :  { %179 = vmatprep.subr.bf16.mxu0 %v280_v6  ;;  %v183_v9 = vpack.c.bf16 %v65_v8, %v64_v7  ;;  %176 = vmatprep.mubr.msk.f32.mxu0 %vm284_vm0, %v283_v12  ;;  %vm67_vm7 = vcmask 326656   ;;  %s148_s6 = sshll.u32 %s285_s1, 4  ;;  %s149_s6 = int_to_ptr.vmem [resolvable:$true] %s148_s6 }
  0x2a   :  { %181 = vmatpush3.bf16.msra.mxu0 %v180_v5  ;;  %s246_s7 = scalar_lea.vmem %s149_s6, 64  ;;  %p251_p3 = scmp.lt.s32.totalorder %s149_s6, %s149_s6 }
  0x2b   :  { %182 = vmatprep.subr.bf16.mxu0 %v280_v6  ;;  %p247_p2 = scmp.ne.s32.totalorder %s149_s6, %s246_s7  ;;  %p252_p4 = scmp.lt.s32.totalorder %s246_s7, %s246_s7 }
  0x2c   :  { %198 = vset.pattern.permute.xlu0 %v281_v10  ;;  %200 = vset.pattern.permute.xlu1 %v282_v11 }
  0x2d   :  { %46 = vperm.xlu0 %198, %v38_v2   ;;  %56 = vperm.xlu1 %200, %v38_v2   ;;  %p253_p5 = por %p252_p4, %p251_p3 }
  0x2e   :  { %184 = vmatpush3.bf16.msra.mxu0 %v183_v9 }
  0x2f   :  { %174 = vmatprep.subr.mxu0 %v283_v12  ;;  %p254_p6 = pnand %p253_p5, %p247_p2 }
  0x31   :  { %201 = vset.pattern.permute.xlu0 %v282_v11 }
  0x32   :  { %175 = vmatpush3.msra.mxu0 %v66_v13 }
  0xa7   :  { %v43_v15 = vpop.permute.xlu0 %42  ;;  %v52_v16 = vpop.permute.xlu1 %51 }
  0xa8   :  { %vm44_vm1 = vcmp.eq.s32.totalorder %v43_v15, %v40_v17  ;;  %vm53_vm4 = vcmp.eq.s32.totalorder %v52_v16, %v40_v17 }
  0xac   :  { %v47_v18 = vpop.permute.xlu0 %46  ;;  %v57_v19 = vpop.permute.xlu1 %56 }
  0xad   :  { %vm48_vm2 = vcmp.eq.s32.totalorder %v47_v18, %v40_v17  ;;  %vm58_vm3 = vcmp.eq.s32.totalorder %v57_v19, %v40_v17 }
  0xae   :  { %vm49_vm5 = vmor %vm44_vm1, %vm48_vm2 }
  0xaf   :  { %vm54_vm6 = vmor %vm49_vm5, %vm53_vm4 }
  0xb0   :  { %vm59_vm8 = vmor %vm54_vm6, %vm58_vm3 }
  0xb1   :  { %v158_v20 = vsel %vm59_vm8, 1.0, %v283_v12 }
  0xb2   :  { %177 = vmatmul.mubr.msk.f32.vlgmr.msra.gmra.mrb[0].mxu0 %vm67_vm7, %v158_v20 }
 0x185   :  { %v137_v21 = vpop.f32.mrb[0].mxu0 }
 0x186   :  { %141 = vst [vmem:[#allocation7] sm:$0xf] %v137_v21  ;;  %v178_v22 = vpop.f32.mrb[1].mxu0 }
 0x187   :  { %257 = shalt.err (!%p254_p6)
}
 0x188   :  { %s258_s10 = scalar_lea.hbm %s346_s2, 64 }
 0x189   :  { %p259_p7 = scmp.ne.s32.totalorder %s346_s2, %s258_s10  ;;  %p262_p8 = scmp.lt.u32.totalorder %s258_s10, %s346_s2 }
 0x18b   :  { %p264_p9 = pnand %p262_p8, %p259_p7 }
 0x18d   :  { %267 = shalt.err (!%p264_p9)
}
 0x18e   :  { %151 = dma.vmem_to_hbm [thread:$0]  %s149_s6, 64, %s346_s2, [#allocation4]  }
 0x18f   :  { %272 = dma.done.wait [#allocation4], 64  }
 0x190   :  { %273 = vsyncadd [#allocation4], 4294967232 }
 0x191   :  { %155 = vsyncpa [#allocation3], 1 }
 0x192   :  { %156 = vsyncpa [#allocation6], 1 }
 0x193   :  { %157 = vsyncpa [#allocation4], 1 }

</bundles_post_ra>
